<compile_context>
chip_gen: v5e
topology: v5e:2x2
jax: 0.10.0
libtpu: 0.0.40
codegen_flags: <defaults>
</compile_context>

<pallas_src>
import functools

import jax
import jax.numpy as jnp
from jax.experimental import pallas as pl
from jax.experimental.pallas import tpu as pltpu

LANE = 128  # TPU lane width; output features are padded to a multiple of this.


def _round_up(x, m):
    return ((x + m - 1) // m) * m


def mlp_softmax_kernel(x_ref, w1_ref, b1_ref, w2_ref, b2_ref, o_ref):
    # hidden = relu(x @ W1 + b1): bf16 MXU matmul, f32 accumulation / elementwise.
    h = jnp.dot(x_ref[...], w1_ref[...], preferred_element_type=jnp.float32)
    h = jnp.maximum(h + b1_ref[...], 0.0)  # b1 is [1, hidden] f32, broadcasts over rows

    # logits = h @ W2 + b2 (W2/b2 are lane-padded; padded lanes carry a -1e30 bias).
    logits = jnp.dot(h.astype(w2_ref.dtype), w2_ref[...],
                     preferred_element_type=jnp.float32)
    logits = logits + b2_ref[...]  # [1, out_pad] f32

    # Numerically stable softmax over the feature axis (padded lanes -> exp == 0).
    m = jnp.max(logits, axis=-1, keepdims=True)
    e = jnp.exp(logits - m)
    s = jnp.sum(e, axis=-1, keepdims=True)
    o_ref[...] = (e * pl.reciprocal(s, approx=True)).astype(o_ref.dtype)


def prepare_params(w1, b1, w2, b2):
    """One-time parameter prep: bf16 casts + lane padding. Do NOT call per forward."""
    in_size, hid = w1.shape
    out_size = w2.shape[1]
    out_pad = max(LANE, _round_up(out_size, LANE))

    w1_bf = w1.astype(jnp.bfloat16)
    b1_f = b1.reshape(1, hid).astype(jnp.float32)

    w2_p = jnp.zeros((hid, out_pad), jnp.bfloat16)
    w2_p = w2_p.at[:, :out_size].set(w2.astype(jnp.bfloat16))
    # Padded columns get a -1e30 bias so softmax assigns them exactly zero mass.
    b2_p = jnp.full((1, out_pad), -1e30, jnp.float32)
    b2_p = b2_p.at[:, :out_size].set(b2.reshape(1, out_size).astype(jnp.float32))

    params = (w1_bf, b1_f, w2_p, b2_p)
    return jax.tree_util.tree_map(jax.block_until_ready, params), out_size


@functools.partial(jax.jit, static_argnames=("out_size", "block_batch"))
def neural_network_forward(x, w1_bf, b1_f, w2_p, b2_p, *, out_size, block_batch=2048):
    batch, in_size = x.shape
    hid = w1_bf.shape[1]
    out_pad = w2_p.shape[1]

    # ---- batch tiling -----------------------------------------------------------
    # Multiple of 16 (bf16 (16,128) tile); aim for >=2 tiles so v7x's two TensorCores
    # both get work, but never more tiles than needed (v5e/v6e: ~0.35 us per grid step).
    tb = min(block_batch, max(16, _round_up(pl.cdiv(batch, 2), 16)))
    padded_batch = _round_up(batch, tb)
    n_tiles = padded_batch // tb
    if n_tiles > 1 and n_tiles % 2 == 1:
        padded_batch += tb          # even tile count -> balanced megacore split
        n_tiles += 1

    x_bf = x.astype(jnp.bfloat16)
    if padded_batch != batch:
        x_bf = jnp.pad(x_bf, ((0, padded_batch - batch), (0, 0)))

    cost = pl.CostEstimate(
        flops=2 * padded_batch * (in_size * hid + hid * out_pad),
        transcendentals=padded_batch * out_pad,
        bytes_accessed=(x_bf.size * 2 + w1_bf.size * 2 + w2_p.size * 2
                        + b1_f.size * 4 + b2_p.size * 4
                        + padded_batch * out_pad * 2),
    )

    out = pl.pallas_call(
        mlp_softmax_kernel,
        out_shape=jax.ShapeDtypeStruct((padded_batch, out_pad), jnp.bfloat16),
        grid_spec=pltpu.PrefetchScalarGridSpec(
            num_scalar_prefetch=0,
            grid=(n_tiles,),
            in_specs=[
                pl.BlockSpec((tb, in_size), lambda i: (i, 0)),    # x: batch-tiled
                pl.BlockSpec((in_size, hid), lambda i: (0, 0)),   # W1: VMEM-resident
                pl.BlockSpec((1, hid), lambda i: (0, 0)),         # b1
                pl.BlockSpec((hid, out_pad), lambda i: (0, 0)),   # W2 (lane-padded)
                pl.BlockSpec((1, out_pad), lambda i: (0, 0)),     # b2 (lane-padded)
            ],
            out_specs=pl.BlockSpec((tb, out_pad), lambda i: (i, 0)),
        ),
        compiler_params=pltpu.CompilerParams(
            dimension_semantics=("parallel",),   # megacore split on v7x
        ),
        cost_estimate=cost,
    )(x_bf, w1_bf, b1_f, w2_p, b2_p)

    # Strip batch / lane padding; cast the (small) real slice back to f32.
    return out[:batch, :out_size].astype(jnp.float32)


def init_linear_params(key, in_features, out_features):
    # Mimic torch.nn.Linear default init: U(-1/sqrt(in), 1/sqrt(in)).
    kw, kb = jax.random.split(key)
    bound = 1.0 / jnp.sqrt(jnp.float32(in_features))
    # Stored as [in, out] so the kernel computes x @ W.
    w = jax.random.uniform(kw, (in_features, out_features), jnp.float32, -bound, bound)
    b = jax.random.uniform(kb, (1, out_features), jnp.float32, -bound, bound)
    return w, b


if __name__ == "__main__":
    input_size, hidden_size, output_size = 32, 64, 16
    batch = 512  # -> tb=256, grid=(2,): both v7x TensorCores busy, 2 steps on v5e/v6e

    key = jax.random.PRNGKey(0)
    kx, k1, k2 = jax.random.split(key, 3)

    x = jax.random.normal(kx, (batch, input_size), jnp.float32)
    w1, b1 = init_linear_params(k1, input_size, hidden_size)
    w2, b2 = init_linear_params(k2, hidden_size, output_size)

    # One-time parameter preparation (hoisted out of the per-call path).
    (w1_bf, b1_f, w2_p, b2_p), out_size = prepare_params(w1, b1, w2, b2)

    out = jax.block_until_ready(
        neural_network_forward(x, w1_bf, b1_f, w2_p, b2_p, out_size=out_size))

    # Pure-JAX f32 reference (kernel runs x/W in bf16 and stores bf16 probabilities).
    h_ref = jnp.maximum(x @ w1 + b1, 0.0)
    ref = jax.nn.softmax(h_ref @ w2 + b2, axis=1)

    assert out.shape == (batch, output_size)
    assert jnp.allclose(jnp.sum(out, axis=1), 1.0, atol=1e-2)
    assert float(jnp.max(jnp.abs(out - ref))) < 3e-2

    print("KERNEL_OK")
</pallas_src>

<mosaic_0001>
module attributes {stable_mosaic.version = 11 : i64} {
  func.func @mlp_softmax_kernel(%arg0: i32, %arg1: memref<256x32xbf16, #tpu.memory_space<vmem>>, %arg2: memref<32x64xbf16, #tpu.memory_space<vmem>>, %arg3: memref<1x64xf32, #tpu.memory_space<vmem>>, %arg4: memref<64x128xbf16, #tpu.memory_space<vmem>>, %arg5: memref<1x128xf32, #tpu.memory_space<vmem>>, %arg6: memref<256x128xbf16, #tpu.memory_space<vmem>>) attributes {dimension_semantics = [#tpu.dimension_semantics<parallel>], iteration_bounds = array<i64: 2>, scalar_prefetch = 0 : i64, scratch_operands = 0 : i64, tpu.core_type = #tpu.core_type<tc>, window_params = [{transform_indices = @transform_0, window_bounds = array<i64: 256, 32>}, {pipeline_mode = #tpu.pipeline_mode<synchronous>, transform_indices = @transform_1, window_bounds = array<i64: 32, 64>}, {pipeline_mode = #tpu.pipeline_mode<synchronous>, transform_indices = @transform_2, window_bounds = array<i64: 1, 64>}, {pipeline_mode = #tpu.pipeline_mode<synchronous>, transform_indices = @transform_3, window_bounds = array<i64: 64, 128>}, {pipeline_mode = #tpu.pipeline_mode<synchronous>, transform_indices = @transform_4, window_bounds = array<i64: 1, 128>}, {transform_indices = @transform_5, window_bounds = array<i64: 256, 128>}]} {
    %c0 = arith.constant 0 : index
    %c0_0 = arith.constant 0 : index
    %0 = vector.load %arg1[%c0, %c0_0] : memref<256x32xbf16, #tpu.memory_space<vmem>>, vector<256x32xbf16>
    %c0_1 = arith.constant 0 : index
    %c0_2 = arith.constant 0 : index
    %1 = vector.load %arg2[%c0_1, %c0_2] : memref<32x64xbf16, #tpu.memory_space<vmem>>, vector<32x64xbf16>
    %cst = arith.constant dense<0.000000e+00> : vector<256x64xf32>
    %2 = tpu.matmul %0, %1, %cst {dimension_numbers = #tpu.dot_dimension_numbers<[1], [0], [0], [1], [0, 0, 1, 1], [], []>} : vector<256x32xbf16>, vector<32x64xbf16>, vector<256x64xf32> -> vector<256x64xf32>
    %c0_3 = arith.constant 0 : index
    %c0_4 = arith.constant 0 : index
    %3 = vector.load %arg3[%c0_3, %c0_4] : memref<1x64xf32, #tpu.memory_space<vmem>>, vector<1x64xf32>
    %4 = vector.broadcast %3 : vector<1x64xf32> to vector<256x64xf32>
    %5 = arith.addf %2, %4 : vector<256x64xf32>
    %cst_5 = arith.constant 0.000000e+00 : f32
    %6 = vector.broadcast %cst_5 : f32 to vector<256x64xf32>
    %7 = arith.maximumf %5, %6 : vector<256x64xf32>
    %8 = arith.truncf %7 : vector<256x64xf32> to vector<256x64xbf16>
    %c0_6 = arith.constant 0 : index
    %c0_7 = arith.constant 0 : index
    %9 = vector.load %arg4[%c0_6, %c0_7] : memref<64x128xbf16, #tpu.memory_space<vmem>>, vector<64x128xbf16>
    %cst_8 = arith.constant dense<0.000000e+00> : vector<256x128xf32>
    %10 = tpu.matmul %8, %9, %cst_8 {dimension_numbers = #tpu.dot_dimension_numbers<[1], [0], [0], [1], [0, 0, 1, 1], [], []>} : vector<256x64xbf16>, vector<64x128xbf16>, vector<256x128xf32> -> vector<256x128xf32>
    %c0_9 = arith.constant 0 : index
    %c0_10 = arith.constant 0 : index
    %11 = vector.load %arg5[%c0_9, %c0_10] : memref<1x128xf32, #tpu.memory_space<vmem>>, vector<1x128xf32>
    %12 = vector.broadcast %11 : vector<1x128xf32> to vector<256x128xf32>
    %13 = arith.addf %10, %12 : vector<256x128xf32>
    %cst_11 = arith.constant dense<0xFF800000> : vector<256xf32>
    %14 = vector.multi_reduction <maximumf>, %13, %cst_11 [1] : vector<256x128xf32> to vector<256xf32>
    %15 = vector.shape_cast %14 : vector<256xf32> to vector<256x1xf32>
    %16 = vector.broadcast %15 : vector<256x1xf32> to vector<256x128xf32>
    %17 = arith.subf %13, %16 : vector<256x128xf32>
    %18 = math.exp %17 : vector<256x128xf32>
    %cst_12 = arith.constant dense<0.000000e+00> : vector<256xf32>
    %19 = vector.multi_reduction <add>, %18, %cst_12 [1] : vector<256x128xf32> to vector<256xf32>
    %20 = vector.shape_cast %19 : vector<256xf32> to vector<256x1xf32>
    %21 = tpu.reciprocal %20 {approx = true} : vector<256x1xf32> -> vector<256x1xf32>
    %22 = vector.broadcast %21 : vector<256x1xf32> to vector<256x128xf32>
    %23 = arith.mulf %18, %22 : vector<256x128xf32>
    %24 = arith.truncf %23 : vector<256x128xf32> to vector<256x128xbf16>
    %c0_13 = arith.constant 0 : index
    %c0_14 = arith.constant 0 : index
    %25 = vector.load %arg6[%c0_13, %c0_14] : memref<256x128xbf16, #tpu.memory_space<vmem>>, vector<256x128xbf16>
    tpu.vector_store %arg6[%c0_13, %c0_14], %24 {strides = array<i32>} : memref<256x128xbf16, #tpu.memory_space<vmem>>, vector<256x128xbf16>,
    return
  }
  func.func @transform_0(%arg0: i32) -> (i32, i32) {
    %c0_i32 = arith.constant 0 : i32
    %c0_i32_0 = arith.constant 0 : i32
    return %arg0, %c0_i32 : i32, i32
  }
  func.func @transform_1(%arg0: i32) -> (i32, i32) {
    %c0_i32 = arith.constant 0 : i32
    %c0_i32_0 = arith.constant 0 : i32
    %c0_i32_1 = arith.constant 0 : i32
    return %c0_i32, %c0_i32_0 : i32, i32
  }
  func.func @transform_2(%arg0: i32) -> (i32, i32) {
    %c0_i32 = arith.constant 0 : i32
    %c0_i32_0 = arith.constant 0 : i32
    %c0_i32_1 = arith.constant 0 : i32
    return %c0_i32, %c0_i32_0 : i32, i32
  }
  func.func @transform_3(%arg0: i32) -> (i32, i32) {
    %c0_i32 = arith.constant 0 : i32
    %c0_i32_0 = arith.constant 0 : i32
    %c0_i32_1 = arith.constant 0 : i32
    return %c0_i32, %c0_i32_0 : i32, i32
  }
  func.func @transform_4(%arg0: i32) -> (i32, i32) {
    %c0_i32 = arith.constant 0 : i32
    %c0_i32_0 = arith.constant 0 : i32
    %c0_i32_1 = arith.constant 0 : i32
    return %c0_i32, %c0_i32_0 : i32, i32
  }
  func.func @transform_5(%arg0: i32) -> (i32, i32) {
    %c0_i32 = arith.constant 0 : i32
    %c0_i32_0 = arith.constant 0 : i32
    return %arg0, %c0_i32 : i32, i32
  }
}

</mosaic_0001>

<bundles_post_ra>
// kernel: neural_network_forward.1
= control target key start
LH: loop header
LB: loop body
LE: loop exit
PB: predicated region body
PF: predicated region fallthrough
CT: control target
= control target key end

     0   :  { %s1559_s18 = smov 0   ;;  %s1999_s0 = inlined_call_operand.vmem [shape: bf16[512,32], index: 0, kind: input, shape index: {}]   ;;  %s2000_s1 = inlined_call_operand.vmem [shape: bf16[32,64], index: 1, kind: input, shape index: {}]   ;;  %s2001_s2 = inlined_call_operand.vmem [shape: f32[1,64], index: 2, kind: input, shape index: {}]   ;;  %s2002_s3 = inlined_call_operand.vmem [shape: bf16[64,128], index: 3, kind: input, shape index: {}]   ;;  %s2003_s4 = inlined_call_operand.vmem [shape: f32[1,128], index: 4, kind: input, shape index: {}]   ;;  %s2004_s5 = inlined_call_operand.vmem [shape: bf16[512,128], index: 5, kind: output, shape index: {}]  }
   0x1 LB: > { %s1129_s19 = sadd.s32 4294967295, %s1527_s18   ;;  %p1133_p0 = scmp.ge.s32.totalorder %s1527_s18, 1  ;;  %s1527_s18 = sphi %s1559_s18, %s15_s18  }
   0x2   : > { %p188_p1 = scmp.lt.s32.totalorder %s1527_s18, 3 }
   0x4   : > { %p189_p2 = pnand %p1133_p0, %p188_p1 }
   0x5   : > { %s1134_s22 = sshll.u32 (!%p189_p2), %s1129_s19, 5 }
   0x6   : > { %192 = sbr.rel (%p189_p2) target bundleno = 796 (0x31c), region = 40  ;;  %p217_p3 = scmp.lt.s32.totalorder (!%p189_p2), %s1134_s22, 63 }
   0xb   : > { %v1277_v0 = vld [vmem:[%s2000_s1 + $0x8] sm:$0xff]  ;;  %v1276_v1 = vld [vmem:[%s2000_s1] sm:$0xff]  ;;  %s2006_s22 = smov (!%p217_p3, %s1134_s22), 63  ;;  %vm361_vm0 = vcmask 261120   ;;  %v1281_v8 = vld [vmem:[%s2002_s3 + $0x18] sm:$0xff]  ;;  %vm583_vm1 = vcmask 523264  }
   0xc   : > { %416 = vmatpush.bf16.msra.mxu0 %v1277_v0  ;;  %1377 = vmatpush.bf16.msra.mxu3 %v1277_v0  ;;  %s1135_s25 = sshll.u32 %s2006_s22, 2  ;;  %v1280_v10 = vld [vmem:[%s2002_s3 + $0x10] sm:$0xff]  ;;  %v1279_v12 = vld [vmem:[%s2002_s3 + $0x8] sm:$0xff]  ;;  %v1278_v13 = vld [vmem:[%s2002_s3] sm:$0xff] }
   0xd   : > { %s1581_s28 = scalar_lea.vmem %s1999_s0, %s1135_s25  ;;  %636 = vmatpush.bf16.msra.mxu1 %v1281_v8  ;;  %1379 = vmatpush.bf16.msra.mxu2 %v1281_v8  ;;  %v1619_v18 = vld [vmem:[%s2001_s2] ss:$0 sm:$0xff]  ;;  %s1879_s19 = scalar_lea.vmem %s2004_s5, %s1135_s25 }
   0xe   : > { %v1260_v2 = vld [vmem:[%s1581_s28] sm:$0xff]  ;;  %v1261_v3 = vld [vmem:[%s1581_s28 + $0x8] sm:$0xff]  ;;  %v1262_v4 = vld [vmem:[%s1581_s28 + $0x10] sm:$0xff] }
   0xf   : > { %v1263_v5 = vld [vmem:[%s1581_s28 + $0x18] sm:$0xff]  ;;  %v1264_v6 = vld [vmem:[%s1581_s28 + $0x20] sm:$0xff]  ;;  %v1265_v7 = vld [vmem:[%s1581_s28 + $0x28] sm:$0xff] }
  0x10   : > { %417 = vmatpush.bf16.msra.mxu0 %v1276_v1  ;;  %1378 = vmatpush.bf16.msra.mxu3 %v1276_v1  ;;  %v1266_v9 = vld [vmem:[%s1581_s28 + $0x30] sm:$0xff]  ;;  %v1269_v11 = vld [vmem:[%s1581_s28 + $0x48] sm:$0xff]  ;;  %v1267_v14 = vld [vmem:[%s1581_s28 + $0x38] sm:$0xff] }
  0x11   : > { %637 = vmatpush.bf16.msra.mxu1 %v1280_v10  ;;  %1380 = vmatpush.bf16.msra.mxu2 %v1280_v10  ;;  %v1270_v15 = vld [vmem:[%s1581_s28 + $0x50] sm:$0xff]  ;;  %v1268_v16 = vld [vmem:[%s1581_s28 + $0x40] sm:$0xff]  ;;  %v1271_v19 = vld [vmem:[%s1581_s28 + $0x58] sm:$0xff] }
  0x12   : > { %v1272_v27 = vld [vmem:[%s1581_s28 + $0x60] sm:$0xff]  ;;  %v1273_v35 = vld [vmem:[%s1581_s28 + $0x68] sm:$0xff]  ;;  %v1274_v43 = vld [vmem:[%s1581_s28 + $0x70] sm:$0xff] }
  0x13   : > { %1210 = vmatmul.msk.bf16.vlgmr.msra.gmra.mxu0 %vm361_vm0, %v1260_v2  ;;  %1219 = vmatmul.msk.bf16.vlgmr.msra.gmra.mxu3 %vm361_vm0, %v1269_v11  ;;  %v1275_v51 = vld [vmem:[%s1581_s28 + $0x78] sm:$0xff] }
  0x15   : > { %638 = vmatpush.bf16.msra.mxu1 %v1279_v12  ;;  %1381 = vmatpush.bf16.msra.mxu2 %v1279_v12 }
  0x19   : > { %639 = vmatpush.bf16.msra.mxu1 %v1278_v13  ;;  %1382 = vmatpush.bf16.msra.mxu2 %v1278_v13 }
  0x23   : > { %1211 = vmatmul.msk.bf16.gmra.mxu0 %vm361_vm0, %v1261_v3  ;;  %1220 = vmatmul.msk.bf16.gmra.mxu3 %vm361_vm0, %v1270_v15 }
  0x33   : > { %1212 = vmatmul.msk.bf16.gmra.mxu0 %vm361_vm0, %v1262_v4  ;;  %1221 = vmatmul.msk.bf16.gmra.mxu3 %vm361_vm0, %v1271_v19 }
  0x43   : > { %1213 = vmatmul.msk.bf16.gmra.mxu0 %vm361_vm0, %v1263_v5  ;;  %1222 = vmatmul.msk.bf16.gmra.mxu3 %vm361_vm0, %v1272_v27 }
  0x53   : > { %1214 = vmatmul.msk.bf16.gmra.mxu0 %vm361_vm0, %v1264_v6  ;;  %1223 = vmatmul.msk.bf16.gmra.mxu3 %vm361_vm0, %v1273_v35 }
  0x63   : > { %1215 = vmatmul.msk.bf16.gmra.mxu0 %vm361_vm0, %v1265_v7  ;;  %1224 = vmatmul.msk.bf16.gmra.mxu3 %vm361_vm0, %v1274_v43 }
  0x73   : > { %1216 = vmatmul.msk.bf16.gmra.mxu0 %vm361_vm0, %v1266_v9  ;;  %1225 = vmatmul.msk.bf16.gmra.mxu3 %vm361_vm0, %v1275_v51 }
  0x83   : > { %1217 = vmatmul.msk.bf16.gmra.mxu0 %vm361_vm0, %v1267_v14 }
  0x90   : > { %v419_v17 = vpop.f32.mrf.mxu0 }
  0x91   : > { %v420_v20 = vadd.f32 %v1619_v18, %v419_v17 }
  0x93   : > { %1218 = vmatmul.msk.bf16.gmra.mxu0 %vm361_vm0, %v1268_v16  ;;  %v499_v23 = vmax.f32 %v420_v20, 0.0 }
  0x96   : > { %v464_v9 = vpop.f32.mrf.mxu3 }
  0x98   : > { %v421_v21 = vpop.f32.mrf.mxu0 }
  0x99   : > { %v422_v22 = vadd.f32 %v1619_v18, %v421_v21 }
  0x9b   : > { %v500_v24 = vmax.f32 %v422_v22, 0.0 }
  0x9d   : > { %v531_v25 = vpack.c.bf16 %v500_v24, %v499_v23  ;;  %v1661_v23 = vld [vmem:[%s2003_s4] ss:$0 sm:$0xff] }
  0x9e   : > { %v466_v13 = vpop.f32.mrf.mxu3 }
  0x9f   : > { %1242 = vmatmul.msk.bf16.vlgmr.msra.gmra.mxu1 %vm583_vm1, %v531_v25 }
  0xa0   : > { %v424_v26 = vpop.f32.mrf.mxu0 }
  0xa1   : > { %v425_v28 = vadd.f32 %v1619_v18, %v424_v26 }
  0xa3   : > { %v501_v31 = vmax.f32 %v425_v28, 0.0 }
  0xa6   : > { %v469_v19 = vpop.f32.mrf.mxu3 }
  0xa8   : > { %v426_v29 = vpop.f32.mrf.mxu0 }
  0xa9   : > { %v427_v30 = vadd.f32 %v1619_v18, %v426_v29 }
  0xab   : > { %v502_v32 = vmax.f32 %v427_v30, 0.0 }
  0xad   : > { %v532_v33 = vpack.c.bf16 %v502_v32, %v501_v31  ;;  %v465_v31 = vadd.f32 %v1619_v18, %v464_v9  ;;  %v467_v32 = vadd.f32 %v1619_v18, %v466_v13 }
  0xae   : > { %v471_v29 = vpop.f32.mrf.mxu3 }
  0xaf   : > { %1243 = vmatmul.msk.bf16.gmra.mxu1 %vm583_vm1, %v532_v33  ;;  %v517_v35 = vmax.f32 %v465_v31, 0.0  ;;  %v472_v43 = vadd.f32 %v1619_v18, %v471_v29 }
  0xb0   : > { %v429_v34 = vpop.f32.mrf.mxu0 }
  0xb1   : > { %v430_v36 = vadd.f32 %v1619_v18, %v429_v34 }
  0xb3   : > { %v503_v39 = vmax.f32 %v430_v36, 0.0  ;;  %v518_v36 = vmax.f32 %v467_v32, 0.0 }
  0xb6   : > { %v474_v34 = vpop.f32.mrf.mxu3 }
  0xb8   : > { %v431_v37 = vpop.f32.mrf.mxu0 }
  0xb9   : > { %v432_v38 = vadd.f32 %v1619_v18, %v431_v37 }
  0xbb   : > { %v504_v40 = vmax.f32 %v432_v38, 0.0  ;;  %v540_v38 = vpack.c.bf16 %v518_v36, %v517_v35 }
  0xbd   : > { %v533_v41 = vpack.c.bf16 %v504_v40, %v503_v39 }
  0xbe   : > { %v476_v40 = vpop.f32.mrf.mxu3 }
  0xbf   : > { %1244 = vmatmul.msk.bf16.gmra.mxu1 %vm583_vm1, %v533_v41 }
  0xc0   : > { %v434_v42 = vpop.f32.mrf.mxu0 }
  0xc1   : > { %v435_v44 = vadd.f32 %v1619_v18, %v434_v42  ;;  %v470_v42 = vadd.f32 %v1619_v18, %v469_v19 }
  0xc3   : > { %v505_v47 = vmax.f32 %v435_v44, 0.0 }
  0xc8   : > { %v436_v45 = vpop.f32.mrf.mxu0 }
  0xc9   : > { %v437_v46 = vadd.f32 %v1619_v18, %v436_v45  ;;  %v519_v45 = vmax.f32 %v470_v42, 0.0 }
  0xcb   : > { %v506_v48 = vmax.f32 %v437_v46, 0.0  ;;  %v520_v46 = vmax.f32 %v472_v43, 0.0 }
  0xcd   : > { %v534_v49 = vpack.c.bf16 %v506_v48, %v505_v47  ;;  %v479_v48 = vpop.f32.mrf.mxu3 }
  0xcf   : > { %1245 = vmatmul.msk.bf16.gmra.mxu1 %vm583_vm1, %v534_v49  ;;  %v541_v49 = vpack.c.bf16 %v520_v46, %v519_v45 }
  0xd0   : > { %v439_v50 = vpop.f32.mrf.mxu0 }
  0xd1   : > { %v440_v52 = vadd.f32 %v1619_v18, %v439_v50 }
  0xd3   : > { %v507_v55 = vmax.f32 %v440_v52, 0.0  ;;  %v475_v52 = vadd.f32 %v1619_v18, %v474_v34 }
  0xd8   : > { %v441_v53 = vpop.f32.mrf.mxu0 }
  0xd9   : > { %v442_v54 = vadd.f32 %v1619_v18, %v441_v53  ;;  %v477_v53 = vadd.f32 %v1619_v18, %v476_v40 }
  0xdb   : > { %v508_v56 = vmax.f32 %v442_v54, 0.0 }
  0xdd   : > { %v535_v57 = vpack.c.bf16 %v508_v56, %v507_v55  ;;  %v481_v55 = vpop.f32.mrf.mxu3  ;;  %v521_v56 = vmax.f32 %v475_v52, 0.0 }
  0xdf   : > { %1246 = vmatmul.msk.bf16.gmra.mxu1 %vm583_vm1, %v535_v57  ;;  %v522_v57 = vmax.f32 %v477_v53, 0.0 }
  0xe0   : > { %v444_v58 = vpop.f32.mrf.mxu0 }
  0xe1   : > { %v445_v59 = vadd.f32 %v1619_v18, %v444_v58 }
  0xe3   : > { %v509_v62 = vmax.f32 %v445_v59, 0.0  ;;  %v542_v59 = vpack.c.bf16 %v522_v57, %v521_v56 }
  0xe8   : > { %v446_v60 = vpop.f32.mrf.mxu0 }
  0xe9   : > { %v447_v61 = vadd.f32 %v1619_v18, %v446_v60 }
  0xeb   : > { %v510_v63 = vmax.f32 %v447_v61, 0.0  ;;  %v484_v61 = vpop.f32.mrf.mxu3 }
  0xed   : > { %v536_v0 = vpack.c.bf16 %v510_v63, %v509_v62  ;;  %v480_v63 = vadd.f32 %v1619_v18, %v479_v48 }
  0xef   : > { %1247 = vmatmul.msk.bf16.gmra.mxu1 %vm583_vm1, %v536_v0  ;;  %v482_v0 = vadd.f32 %v1619_v18, %v481_v55 }
  0xf0   : > { %v449_v1 = vpop.f32.mrf.mxu0 }
  0xf1   : > { %v450_v2 = vadd.f32 %v1619_v18, %v449_v1 }
  0xf3   : > { %v511_v5 = vmax.f32 %v450_v2, 0.0  ;;  %v523_v2 = vmax.f32 %v480_v63, 0.0 }
  0xf8   : > { %v451_v3 = vpop.f32.mrf.mxu0 }
  0xf9   : > { %v452_v4 = vadd.f32 %v1619_v18, %v451_v3  ;;  %v524_v3 = vmax.f32 %v482_v0, 0.0 }
  0xfb   : > { %v512_v6 = vmax.f32 %v452_v4, 0.0  ;;  %v486_v4 = vpop.f32.mrf.mxu3 }
  0xfd   : > { %v537_v7 = vpack.c.bf16 %v512_v6, %v511_v5  ;;  %v543_v6 = vpack.c.bf16 %v524_v3, %v523_v2 }
  0xff   : > { %1248 = vmatmul.msk.bf16.gmra.mxu1 %vm583_vm1, %v537_v7 }
 0x100   : > { %v454_v8 = vpop.f32.mrf.mxu0 }
 0x101   : > { %v455_v10 = vadd.f32 %v1619_v18, %v454_v8 }
 0x103   : > { %v513_v14 = vmax.f32 %v455_v10, 0.0  ;;  %v489_v9 = vpop.f32.mrf.mxu3  ;;  %v485_v10 = vadd.f32 %v1619_v18, %v484_v61 }
 0x105   : > { %v525_v13 = vmax.f32 %v485_v10, 0.0 }
 0x108   : > { %v456_v11 = vpop.f32.mrf.mxu0 }
 0x109   : > { %v457_v12 = vadd.f32 %v1619_v18, %v456_v11  ;;  %v487_v11 = vadd.f32 %v1619_v18, %v486_v4 }
 0x10b   : > { %v514_v15 = vmax.f32 %v457_v12, 0.0  ;;  %v491_v19 = vpop.f32.mrf.mxu3 }
 0x10d   : > { %v538_v16 = vpack.c.bf16 %v514_v15, %v513_v14  ;;  %v526_v14 = vmax.f32 %v487_v11, 0.0 }
 0x10f   : > { %1249 = vmatmul.msk.bf16.gmra.mxu1 %vm583_vm1, %v538_v16  ;;  %v544_v16 = vpack.c.bf16 %v526_v14, %v525_v13 }
 0x110   : > { %v459_v17 = vpop.f32.mrf.mxu0 }
 0x111   : > { %v460_v20 = vadd.f32 %v1619_v18, %v459_v17 }
 0x113   : > { %v515_v24 = vmax.f32 %v460_v20, 0.0 }
 0x118   : > { %v461_v21 = vpop.f32.mrf.mxu0 }
 0x119   : > { %v462_v22 = vadd.f32 %v1619_v18, %v461_v21  ;;  %v490_v21 = vadd.f32 %v1619_v18, %v489_v9 }
 0x11b   : > { %v516_v25 = vmax.f32 %v462_v22, 0.0  ;;  %v492_v22 = vadd.f32 %v1619_v18, %v491_v19 }
 0x11c   : > { %v641_v26 = vpop.f32.mrf.mxu1 }
 0x11d   : > { %v539_v27 = vpack.c.bf16 %v516_v25, %v515_v24  ;;  %v1664_v28 = vadd.f32 %v1661_v23, %v641_v26  ;;  %v494_v25 = vpop.f32.mrf.mxu3  ;;  %v527_v26 = vmax.f32 %v490_v21, 0.0 }
 0x11e   : > { %v495_v35 = vadd.f32 %v1619_v18, %v494_v25 }
 0x11f   : > { %1250 = vmatmul.msk.bf16.vlgmr.msra.gmra.mxu2 %vm583_vm1, %v539_v27  ;;  %721 = vmax.xlane.f32.xlu0 %v1664_v28  ;;  %v528_v27 = vmax.f32 %v492_v22, 0.0 }
 0x124   : > { %v643_v30 = vpop.f32.mrf.mxu1 }
 0x125   : > { %v1671_v33 = vadd.f32 %v1661_v23, %v643_v30  ;;  %v545_v30 = vpack.c.bf16 %v528_v27, %v527_v26  ;;  %v496_v32 = vpop.f32.mrf.mxu3 }
 0x126   : > { %v497_v36 = vadd.f32 %v1619_v18, %v496_v32 }
 0x127   : > { %723 = vmax.xlane.f32.xlu0 %v1671_v33 }
 0x128   : > { %v530_v40 = vmax.f32 %v497_v36, 0.0 }
 0x12c   : > { %v646_v37 = vpop.f32.mrf.mxu1 }
 0x12d   : > { %v1675_v39 = vadd.f32 %v1661_v23, %v646_v37 }
 0x12f   : > { %1251 = vmatmul.msk.bf16.gmra.mxu2 %vm583_vm1, %v540_v38  ;;  %725 = vmax.xlane.f32.xlu1 %v1675_v39  ;;  %v529_v38 = vmax.f32 %v495_v35, 0.0 }
 0x131   : > { %v546_v42 = vpack.c.bf16 %v530_v40, %v529_v38 }
 0x134   : > { %v648_v41 = vpop.f32.mrf.mxu1 }
 0x135   : > { %v1682_v44 = vadd.f32 %v1661_v23, %v648_v41 }
 0x137   : > { %727 = vmax.xlane.f32.xlu1 %v1682_v44 }
 0x13c   : > { %v651_v47 = vpop.f32.mrf.mxu1 }
 0x13d   : > { %v1686_v50 = vadd.f32 %v1661_v23, %v651_v47 }
 0x13f   : > { %1252 = vmatmul.msk.bf16.gmra.mxu2 %vm583_vm1, %v541_v49  ;;  %729 = vmax.xlane.f32.xlu2 %v1686_v50 }
 0x144   : > { %v653_v51 = vpop.f32.mrf.mxu1 }
 0x145   : > { %v1693_v54 = vadd.f32 %v1661_v23, %v653_v51 }
 0x147   : > { %731 = vmax.xlane.f32.xlu2 %v1693_v54 }
 0x14c   : > { %v656_v58 = vpop.f32.mrf.mxu1 }
 0x14d   : > { %v1697_v60 = vadd.f32 %v1661_v23, %v656_v58 }
 0x14f   : > { %1253 = vmatmul.msk.bf16.gmra.mxu2 %vm583_vm1, %v542_v59  ;;  %733 = vmax.xlane.f32.xlu0 %v1697_v60 }
 0x154   : > { %v658_v62 = vpop.f32.mrf.mxu1 }
 0x155   : > { %v1704_v1 = vadd.f32 %v1661_v23, %v658_v62 }
 0x157   : > { %735 = vmax.xlane.f32.xlu1 %v1704_v1 }
 0x15c   : > { %v661_v5 = vpop.f32.mrf.mxu1 }
 0x15d   : > { %v1708_v7 = vadd.f32 %v1661_v23, %v661_v5 }
 0x15f   : > { %1254 = vmatmul.msk.bf16.gmra.mxu2 %vm583_vm1, %v543_v6  ;;  %737 = vmax.xlane.f32.xlu2 %v1708_v7 }
 0x164   : > { %v663_v8 = vpop.f32.mrf.mxu1 }
 0x165   : > { %v1715_v12 = vadd.f32 %v1661_v23, %v663_v8 }
 0x167   : > { %739 = vmax.xlane.f32.xlu0 %v1715_v12 }
 0x16c   : > { %v666_v15 = vpop.f32.mrf.mxu1 }
 0x16d   : > { %v1719_v17 = vadd.f32 %v1661_v23, %v666_v15 }
 0x16f   : > { %1255 = vmatmul.msk.bf16.gmra.mxu2 %vm583_vm1, %v544_v16  ;;  %741 = vmax.xlane.f32.xlu1 %v1719_v17 }
 0x174   : > { %v668_v20 = vpop.f32.mrf.mxu1 }
 0x175   : > { %v1726_v24 = vadd.f32 %v1661_v23, %v668_v20 }
 0x177   : > { %743 = vmax.xlane.f32.xlu2 %v1726_v24 }
 0x17c   : > { %v671_v29 = vpop.f32.mrf.mxu1 }
 0x17d   : > { %v1730_v31 = vadd.f32 %v1661_v23, %v671_v29 }
 0x17f   : > { %1256 = vmatmul.msk.bf16.gmra.mxu2 %vm583_vm1, %v545_v30  ;;  %745 = vmax.xlane.f32.xlu0 %v1730_v31 }
 0x184   : > { %v673_v34 = vpop.f32.mrf.mxu1 }
 0x185   : > { %v1737_v37 = vadd.f32 %v1661_v23, %v673_v34 }
 0x187   : > { %747 = vmax.xlane.f32.xlu1 %v1737_v37 }
 0x18c   : > { %v676_v41 = vpop.f32.mrf.mxu1 }
 0x18d   : > { %v1741_v43 = vadd.f32 %v1661_v23, %v676_v41 }
 0x18f   : > { %1257 = vmatmul.msk.bf16.gmra.mxu2 %vm583_vm1, %v546_v42  ;;  %749 = vmax.xlane.f32.xlu2 %v1741_v43 }
 0x192   : > { %v722_v45 = vpop.xlane.xlu0 %721 }
 0x193   : > { %v785_v46 = vsub.f32 %v1664_v28, %v722_v45 }
 0x194   : > { %v678_v18 = vpop.f32.mrf.mxu1 }
 0x195   : > { %v817_v47 = vmul.f32 1.442695, %v785_v46  ;;  %v1747_v48 = vadd.f32 %v1661_v23, %v678_v18 }
 0x197   : > { %1393 = vpow2.f32 %v817_v47  ;;  %751 = vmax.xlane.f32.xlu0 %v1747_v48 }
 0x19a   : > { %v724_v49 = vpop.xlane.xlu0 %723 }
 0x19b   : > { %v786_v51 = vsub.f32 %v1671_v33, %v724_v49 }
 0x19d   : > { %v1751_v52 = vpop.eup %1393  ;;  %v819_v53 = vmul.f32 1.442695, %v786_v51 }
 0x19e   : > { %881 = vadd.xlane.f32.xlu2 %v1751_v52 }
 0x19f   : > { %1395 = vpow2.f32 %v819_v53 }
 0x1a2   : > { %v681_v55 = vpop.f32.mrf.mxu2  ;;  %v726_v56 = vpop.xlane.xlu1 %725 }
 0x1a3   : > { %v1755_v28 = vadd.f32 %v1661_v23, %v681_v55  ;;  %v787_v57 = vsub.f32 %v1675_v39, %v726_v56 }
 0x1a5   : > { %v1758_v58 = vpop.eup %1395  ;;  %v821_v59 = vmul.f32 1.442695, %v787_v57  ;;  %753 = vmax.xlane.f32.xlu1 %v1755_v28 }
 0x1a6   : > { %883 = vadd.xlane.f32.xlu0 %v1758_v58 }
 0x1a7   : > { %1397 = vpow2.f32 %v821_v59 }
 0x1aa   : > { %v683_v33 = vpop.f32.mrf.mxu2  ;;  %v728_v61 = vpop.xlane.xlu1 %727 }
 0x1ab   : > { %v1763_v62 = vadd.f32 %v1661_v23, %v683_v33  ;;  %v788_v63 = vsub.f32 %v1682_v44, %v728_v61 }
 0x1ad   : > { %v1766_v0 = vpop.eup %1397  ;;  %v823_v2 = vmul.f32 1.442695, %v788_v63  ;;  %755 = vmax.xlane.f32.xlu2 %v1763_v62 }
 0x1ae   : > { %885 = vadd.xlane.f32.xlu1 %v1766_v0 }
 0x1af   : > { %1399 = vpow2.f32 %v823_v2 }
 0x1b2   : > { %v686_v39 = vpop.f32.mrf.mxu2  ;;  %v730_v3 = vpop.xlane.xlu2 %729 }
 0x1b3   : > { %v1771_v4 = vadd.f32 %v1661_v23, %v686_v39  ;;  %v789_v5 = vsub.f32 %v1686_v50, %v730_v3 }
 0x1b5   : > { %v1774_v6 = vpop.eup %1399  ;;  %v825_v8 = vmul.f32 1.442695, %v789_v5  ;;  %757 = vmax.xlane.f32.xlu0 %v1771_v4 }
 0x1b6   : > { %887 = vadd.xlane.f32.xlu2 %v1774_v6 }
 0x1b7   : > { %1401 = vpow2.f32 %v825_v8 }
 0x1ba   : > { %v688_v44 = vpop.f32.mrf.mxu2  ;;  %v732_v9 = vpop.xlane.xlu2 %731 }
 0x1bb   : > { %v1779_v10 = vadd.f32 %v1661_v23, %v688_v44  ;;  %v790_v11 = vsub.f32 %v1693_v54, %v732_v9 }
 0x1bd   : > { %v1782_v13 = vpop.eup %1401  ;;  %v827_v14 = vmul.f32 1.442695, %v790_v11  ;;  %759 = vmax.xlane.f32.xlu1 %v1779_v10 }
 0x1be   : > { %889 = vadd.xlane.f32.xlu0 %v1782_v13 }
 0x1bf   : > { %1403 = vpow2.f32 %v827_v14 }
 0x1c2   : > { %v691_v50 = vpop.f32.mrf.mxu2  ;;  %v734_v15 = vpop.xlane.xlu0 %733 }
 0x1c3   : > { %v1787_v16 = vadd.f32 %v1661_v23, %v691_v50  ;;  %v791_v19 = vsub.f32 %v1697_v60, %v734_v15 }
 0x1c5   : > { %v1790_v20 = vpop.eup %1403  ;;  %v829_v21 = vmul.f32 1.442695, %v791_v19  ;;  %761 = vmax.xlane.f32.xlu2 %v1787_v16 }
 0x1c6   : > { %891 = vadd.xlane.f32.xlu1 %v1790_v20 }
 0x1c7   : > { %1405 = vpow2.f32 %v829_v21 }
 0x1ca   : > { %v693_v54 = vpop.f32.mrf.mxu2  ;;  %v736_v22 = vpop.xlane.xlu1 %735 }
 0x1cb   : > { %v1795_v25 = vadd.f32 %v1661_v23, %v693_v54  ;;  %v792_v26 = vsub.f32 %v1704_v1, %v736_v22 }
 0x1cd   : > { %v1798_v27 = vpop.eup %1405  ;;  %v831_v29 = vmul.f32 1.442695, %v792_v26  ;;  %763 = vmax.xlane.f32.xlu0 %v1795_v25 }
 0x1ce   : > { %893 = vadd.xlane.f32.xlu2 %v1798_v27 }
 0x1cf   : > { %1407 = vpow2.f32 %v831_v29 }
 0x1d2   : > { %v696_v60 = vpop.f32.mrf.mxu2  ;;  %v738_v30 = vpop.xlane.xlu2 %737 }
 0x1d3   : > { %v1803_v32 = vadd.f32 %v1661_v23, %v696_v60  ;;  %v793_v34 = vsub.f32 %v1708_v7, %v738_v30 }
 0x1d5   : > { %v1806_v35 = vpop.eup %1407  ;;  %v833_v36 = vmul.f32 1.442695, %v793_v34  ;;  %765 = vmax.xlane.f32.xlu1 %v1803_v32 }
 0x1d6   : > { %895 = vadd.xlane.f32.xlu0 %v1806_v35 }
 0x1d7   : > { %1409 = vpow2.f32 %v833_v36 }
 0x1da   : > { %v698_v1 = vpop.f32.mrf.mxu2  ;;  %v740_v38 = vpop.xlane.xlu0 %739 }
 0x1db   : > { %v1811_v40 = vadd.f32 %v1661_v23, %v698_v1  ;;  %v794_v41 = vsub.f32 %v1715_v12, %v740_v38 }
 0x1dd   : > { %v1814_v42 = vpop.eup %1409  ;;  %v835_v45 = vmul.f32 1.442695, %v794_v41  ;;  %767 = vmax.xlane.f32.xlu2 %v1811_v40 }
 0x1de   : > { %897 = vadd.xlane.f32.xlu1 %v1814_v42 }
 0x1df   : > { %1411 = vpow2.f32 %v835_v45 }
 0x1e2   : > { %v701_v7 = vpop.f32.mrf.mxu2  ;;  %v742_v46 = vpop.xlane.xlu1 %741 }
 0x1e3   : > { %v1819_v18 = vadd.f32 %v1661_v23, %v701_v7  ;;  %v795_v47 = vsub.f32 %v1719_v17, %v742_v46 }
 0x1e5   : > { %v1822_v49 = vpop.eup %1411  ;;  %v837_v51 = vmul.f32 1.442695, %v795_v47  ;;  %769 = vmax.xlane.f32.xlu0 %v1819_v18 }
 0x1e6   : > { %899 = vadd.xlane.f32.xlu2 %v1822_v49 }
 0x1e7   : > { %1413 = vpow2.f32 %v837_v51 }
 0x1ea   : > { %v703_v12 = vpop.f32.mrf.mxu2  ;;  %v744_v2 = vpop.xlane.xlu2 %743 }
 0x1eb   : > { %v1827_v53 = vadd.f32 %v1661_v23, %v703_v12  ;;  %v796_v26 = vsub.f32 %v1726_v24, %v744_v2 }
 0x1ed   : > { %v1829_v55 = vpop.eup %1413  ;;  %771 = vmax.xlane.f32.xlu1 %v1827_v53  ;;  %v839_v60 = vmul.f32 1.442695, %v796_v26 }
 0x1ee   : > { %901 = vadd.xlane.f32.xlu0 %v1829_v55 }
 0x1f2   : > { %v706_v56 = vpop.f32.mrf.mxu2  ;;  %v746_v61 = vpop.xlane.xlu0 %745 }
 0x1f3   : > { %v1834_v17 = vadd.f32 %v1661_v23, %v706_v56  ;;  %v797_v39 = vsub.f32 %v1730_v31, %v746_v61 }
 0x1f5   : > { %773 = vmax.xlane.f32.xlu2 %v1834_v17  ;;  %v841_v3 = vmul.f32 1.442695, %v797_v39 }
 0x1f7   : > { %1415 = vpow2.f32 %v841_v3 }
 0x1fa   : > { %v708_v57 = vpop.f32.mrf.mxu2  ;;  %v748_v8 = vpop.xlane.xlu1 %747 }
 0x1fb   : > { %v1838_v59 = vadd.f32 %v1661_v23, %v708_v57  ;;  %v798_v14 = vsub.f32 %v1737_v37, %v748_v8 }
 0x1fd   : > { %775 = vmax.xlane.f32.xlu0 %v1838_v59  ;;  %v843_v15 = vmul.f32 1.442695, %v798_v14  ;;  %v1855_v54 = vpop.eup %1415 }
 0x1ff   : > { %1417 = vpow2.f32 %v843_v15 }
 0x202   : > { %v711_v33 = vpop.f32.mrf.mxu2  ;;  %v750_v11 = vpop.xlane.xlu2 %749 }
 0x203   : > { %v1842_v63 = vadd.f32 %v1661_v23, %v711_v33 }
 0x205   : > { %777 = vmax.xlane.f32.xlu1 %v1842_v63  ;;  %v1864_v1 = vpop.eup %1417 }
 0x20a   : > { %v713_v5 = vpop.f32.mrf.mxu2  ;;  %v752_v9 = vpop.xlane.xlu0 %751 }
 0x20b   : > { %v1847_v44 = vadd.f32 %v1661_v23, %v713_v5  ;;  %v800_v50 = vsub.f32 %v1747_v48, %v752_v9 }
 0x20d   : > { %779 = vmax.xlane.f32.xlu2 %v1847_v44  ;;  %v847_v21 = vmul.f32 1.442695, %v800_v50 }
 0x20f   : > { %1419 = vpow2.f32 %v847_v21 }
 0x211   : > { %v882_v22 = vpop.xlane.xlu2 %881 }
 0x212   : > { %v716_v19 = vpop.f32.mrf.mxu2  ;;  %1421 = vrcp.f32 %v882_v22 }
 0x213   : > { %v1853_v31 = vadd.f32 %v1661_v23, %v716_v19 }
 0x215   : > { %781 = vmax.xlane.f32.xlu0 %v1853_v31  ;;  %905 = vadd.xlane.f32.xlu2 %v1855_v54  ;;  %v1866_v38 = vpop.eup %1419 }
 0x218   : > { %v754_v37 = vpop.xlane.xlu1 %753  ;;  %v1422_v24 = vpop.eup %1421 }
 0x219   : > { %v801_v48 = vsub.f32 %v1755_v28, %v754_v37  ;;  %v884_v29 = vpop.xlane.xlu0 %883  ;;  %v799_v28 = vsub.f32 %v1741_v43, %v750_v11 }
 0x21a   : > { %1423 = vrcp.f32 %v884_v29  ;;  %v718_v30 = vpop.f32.mrf.mxu2 }
 0x21b   : > { %v849_v34 = vmul.f32 1.442695, %v801_v48  ;;  %v1862_v36 = vadd.f32 %v1661_v23, %v718_v30  ;;  %v977_v23 = vmul.f32 %v1422_v24, %v1751_v52  ;;  %v845_v46 = vmul.f32 1.442695, %v799_v28 }
 0x21d   : > { %1425 = vpow2.f32 %v849_v34  ;;  %783 = vmax.xlane.f32.xlu1 %v1862_v36  ;;  %907 = vadd.xlane.f32.xlu0 %v1864_v1 }
 0x21e   : > { %1427 = vpow2.f32 %v839_v60  ;;  %911 = vadd.xlane.f32.xlu2 %v1866_v38 }
 0x21f   : > { %1429 = vpow2.f32 %v845_v46 }
 0x220   : > { %v1424_v41 = vpop.eup %1423  ;;  %v756_v45 = vpop.xlane.xlu2 %755 }
 0x221   : > { %v978_v7 = vmul.f32 %v1424_v41, %v1758_v58  ;;  %v886_v12 = vpop.xlane.xlu1 %885  ;;  %v802_v52 = vsub.f32 %v1763_v62, %v756_v45 }
 0x222   : > { %1431 = vrcp.f32 %v886_v12 }
 0x223   : > { %v1881_v47 = vpop.eup %1425  ;;  %v1285_v51 = vpack.c.bf16 %v978_v7, %v977_v23  ;;  %v851_v33 = vmul.f32 1.442695, %v802_v52 }
 0x224   : > { %v1883_v43 = vpop.eup %1427 }
 0x225   : > { %1286 = vst [vmem:[%s1879_s19] sm:$0xff] %v1285_v51   ;;  %903 = vadd.xlane.f32.xlu1 %v1883_v43  ;;  %913 = vadd.xlane.f32.xlu0 %v1881_v47  ;;  %v1890_v2 = vpop.eup %1429 }
 0x228   : > { %v758_v58 = vpop.xlane.xlu0 %757  ;;  %v1432_v39 = vpop.eup %1431 }
 0x229   : > { %v803_v56 = vsub.f32 %v1771_v4, %v758_v58  ;;  %v888_v57 = vpop.xlane.xlu2 %887  ;;  %v979_v62 = vmul.f32 %v1432_v39, %v1766_v0 }
 0x22a   : > { %1433 = vrcp.f32 %v888_v57 }
 0x22b   : > { %v853_v61 = vmul.f32 1.442695, %v803_v56 }
 0x22d   : > { %1435 = vpow2.f32 %v853_v61  ;;  %909 = vadd.xlane.f32.xlu1 %v1890_v2 }
 0x22e   : > { %1437 = vpow2.f32 %v851_v33 }
 0x230   : > { %v1434_v3 = vpop.eup %1433  ;;  %v760_v5 = vpop.xlane.xlu1 %759 }
 0x231   : > { %v980_v8 = vmul.f32 %v1434_v3, %v1774_v6  ;;  %v804_v4 = vsub.f32 %v1779_v10, %v760_v5  ;;  %v890_v15 = vpop.xlane.xlu0 %889 }
 0x233   : > { %v1896_v9 = vpop.eup %1435  ;;  %v1290_v11 = vpack.c.bf16 %v980_v8, %v979_v62  ;;  %v855_v14 = vmul.f32 1.442695, %v804_v4 }
 0x234   : > { %v1898_v50 = vpop.eup %1437  ;;  %917 = vadd.xlane.f32.xlu2 %v1896_v9 }
 0x235   : > { %1362 = vst [vmem:[%s1879_s19 + $0x8] sm:$0xff] %v1290_v11   ;;  %1439 = vpow2.f32 %v855_v14  ;;  %915 = vadd.xlane.f32.xlu1 %v1898_v50 }
 0x236   : > { %1441 = vrcp.f32 %v890_v15 }
 0x238   : > { %v762_v19 = vpop.xlane.xlu2 %761 }
 0x239   : > { %v805_v0 = vsub.f32 %v1787_v16, %v762_v19  ;;  %v892_v6 = vpop.xlane.xlu1 %891 }
 0x23a   : > { %1443 = vrcp.f32 %v892_v6 }
 0x23b   : > { %v1904_v10 = vpop.eup %1439  ;;  %v857_v21 = vmul.f32 1.442695, %v805_v0 }
 0x23c   : > { %919 = vadd.xlane.f32.xlu0 %v1904_v10  ;;  %v1442_v22 = vpop.eup %1441 }
 0x23d   : > { %1445 = vpow2.f32 %v857_v21  ;;  %v981_v48 = vmul.f32 %v1442_v22, %v1782_v13 }
 0x240   : > { %v1444_v26 = vpop.eup %1443  ;;  %v764_v37 = vpop.xlane.xlu0 %763 }
 0x241   : > { %v982_v29 = vmul.f32 %v1444_v26, %v1790_v20  ;;  %v806_v60 = vsub.f32 %v1795_v25, %v764_v37  ;;  %v894_v24 = vpop.xlane.xlu2 %893 }
 0x243   : > { %v1910_v30 = vpop.eup %1445  ;;  %v1295_v16 = vpack.c.bf16 %v982_v29, %v981_v48  ;;  %v859_v34 = vmul.f32 1.442695, %v806_v60 }
 0x244   : > { %921 = vadd.xlane.f32.xlu1 %v1910_v30 }
 0x245   : > { %1363 = vst [vmem:[%s1879_s19 + $0x10] sm:$0xff] %v1295_v16   ;;  %1447 = vpow2.f32 %v859_v34 }
 0x246   : > { %1449 = vrcp.f32 %v894_v24 }
 0x248   : > { %v766_v28 = vpop.xlane.xlu1 %765 }
 0x249   : > { %v807_v41 = vsub.f32 %v1803_v32, %v766_v28  ;;  %v896_v45 = vpop.xlane.xlu0 %895 }
 0x24a   : > { %1451 = vrcp.f32 %v896_v45 }
 0x24b   : > { %v1915_v13 = vpop.eup %1447  ;;  %v861_v20 = vmul.f32 1.442695, %v807_v41 }
 0x24c   : > { %923 = vadd.xlane.f32.xlu2 %v1915_v13  ;;  %v1450_v25 = vpop.eup %1449 }
 0x24d   : > { %1453 = vpow2.f32 %v861_v20  ;;  %v983_v46 = vmul.f32 %v1450_v25, %v1798_v27 }
 0x250   : > { %v1452_v23 = vpop.eup %1451  ;;  %v768_v7 = vpop.xlane.xlu2 %767 }
 0x251   : > { %v984_v51 = vmul.f32 %v1452_v23, %v1806_v35  ;;  %v808_v12 = vsub.f32 %v1811_v40, %v768_v7  ;;  %v898_v56 = vpop.xlane.xlu1 %897 }
 0x253   : > { %v1921_v52 = vpop.eup %1453  ;;  %v1300_v32 = vpack.c.bf16 %v984_v51, %v983_v46  ;;  %v863_v58 = vmul.f32 1.442695, %v808_v12 }
 0x254   : > { %925 = vadd.xlane.f32.xlu0 %v1921_v52 }
 0x255   : > { %1364 = vst [vmem:[%s1879_s19 + $0x18] sm:$0xff] %v1300_v32   ;;  %1455 = vpow2.f32 %v863_v58 }
 0x256   : > { %1457 = vrcp.f32 %v898_v56 }
 0x258   : > { %v770_v57 = vpop.xlane.xlu0 %769 }
 0x259   : > { %v809_v33 = vsub.f32 %v1819_v18, %v770_v57  ;;  %v900_v61 = vpop.xlane.xlu2 %899 }
 0x25a   : > { %1459 = vrcp.f32 %v900_v61 }
 0x25b   : > { %v1926_v27 = vpop.eup %1455  ;;  %v865_v35 = vmul.f32 1.442695, %v809_v33 }
 0x25c   : > { %927 = vadd.xlane.f32.xlu1 %v1926_v27  ;;  %v1458_v40 = vpop.eup %1457 }
 0x25d   : > { %1461 = vpow2.f32 %v865_v35  ;;  %v985_v5 = vmul.f32 %v1458_v40, %v1814_v42 }
 0x260   : > { %v1460_v39 = vpop.eup %1459  ;;  %v772_v3 = vpop.xlane.xlu1 %771 }
 0x261   : > { %v986_v62 = vmul.f32 %v1460_v39, %v1822_v49  ;;  %v810_v8 = vsub.f32 %v1827_v53, %v772_v3  ;;  %v902_v14 = vpop.xlane.xlu0 %901 }
 0x263   : > { %v1932_v4 = vpop.eup %1461  ;;  %v1305_v18 = vpack.c.bf16 %v986_v62, %v985_v5  ;;  %v867_v11 = vmul.f32 1.442695, %v810_v8 }
 0x264   : > { %929 = vadd.xlane.f32.xlu2 %v1932_v4 }
 0x265   : > { %1365 = vst [vmem:[%s1879_s19 + $0x20] sm:$0xff] %v1305_v18   ;;  %1463 = vpow2.f32 %v867_v11 }
 0x268   : > { %v774_v15 = vpop.xlane.xlu2 %773 }
 0x269   : > { %v811_v19 = vsub.f32 %v1834_v17, %v774_v15 }
 0x26b   : > { %v1937_v0 = vpop.eup %1463  ;;  %v869_v6 = vmul.f32 1.442695, %v811_v19 }
 0x26c   : > { %931 = vadd.xlane.f32.xlu0 %v1937_v0 }
 0x26d   : > { %1465 = vpow2.f32 %v869_v6 }
 0x270   : > { %v776_v42 = vpop.xlane.xlu0 %775 }
 0x271   : > { %v812_v49 = vsub.f32 %v1838_v59, %v776_v42 }
 0x273   : > { %v1941_v53 = vpop.eup %1465  ;;  %v871_v21 = vmul.f32 1.442695, %v812_v49 }
 0x274   : > { %933 = vadd.xlane.f32.xlu1 %v1941_v53 }
 0x275   : > { %1467 = vpow2.f32 %v871_v21 }
 0x278   : > { %v778_v22 = vpop.xlane.xlu1 %777 }
 0x279   : > { %v813_v26 = vsub.f32 %v1842_v63, %v778_v22 }
 0x27b   : > { %v1945_v37 = vpop.eup %1467  ;;  %v873_v17 = vmul.f32 1.442695, %v813_v26 }
 0x27c   : > { %935 = vadd.xlane.f32.xlu2 %v1945_v37 }
 0x27d   : > { %1469 = vpow2.f32 %v873_v17 }
 0x280   : > { %v780_v48 = vpop.xlane.xlu2 %779 }
 0x281   : > { %v814_v29 = vsub.f32 %v1847_v44, %v780_v48 }
 0x283   : > { %v1949_v60 = vpop.eup %1469  ;;  %v875_v59 = vmul.f32 1.442695, %v814_v29 }
 0x284   : > { %937 = vadd.xlane.f32.xlu0 %v1949_v60 }
 0x285   : > { %1471 = vpow2.f32 %v875_v59 }
 0x288   : > { %v782_v16 = vpop.xlane.xlu0 %781  ;;  %v906_v28 = vpop.xlane.xlu2 %905 }
 0x289   : > { %v815_v34 = vsub.f32 %v1853_v31, %v782_v16 }
 0x28b   : > { %v1953_v24 = vpop.eup %1471  ;;  %v877_v63 = vmul.f32 1.442695, %v815_v34 }
 0x28c   : > { %939 = vadd.xlane.f32.xlu1 %v1953_v24 }
 0x28d   : > { %1473 = vpow2.f32 %v877_v63 }
 0x28e   : > { %1475 = vrcp.f32 %v906_v28 }
 0x290   : > { %v784_v41 = vpop.xlane.xlu1 %783  ;;  %v908_v45 = vpop.xlane.xlu0 %907 }
 0x291   : > { %v816_v44 = vsub.f32 %v1862_v36, %v784_v41  ;;  %1477 = vrcp.f32 %v908_v45  ;;  %v912_v32 = vpop.xlane.xlu2 %911 }
 0x293   : > { %v1957_v20 = vpop.eup %1473  ;;  %v879_v25 = vmul.f32 1.442695, %v816_v44 }
 0x294   : > { %941 = vadd.xlane.f32.xlu2 %v1957_v20  ;;  %v1476_v31 = vpop.eup %1475 }
 0x295   : > { %1479 = vpow2.f32 %v879_v25  ;;  %v989_v7 = vmul.f32 %v1476_v31, %v1855_v54 }
 0x296   : > { %1481 = vrcp.f32 %v902_v14 }
 0x297   : > { %v1478_v23 = vpop.eup %1477 }
 0x298   : > { %v990_v46 = vmul.f32 %v1478_v23, %v1864_v1  ;;  %v904_v51 = vpop.xlane.xlu1 %903  ;;  %v914_v61 = vpop.xlane.xlu0 %913 }
 0x299   : > { %1483 = vrcp.f32 %v904_v51 }
 0x29a   : > { %v1315_v12 = vpack.c.bf16 %v990_v46, %v989_v7  ;;  %1485 = vrcp.f32 %v912_v32 }
 0x29b   : > { %v1962_v36 = vpop.eup %1479 }
 0x29c   : > { %1367 = vst [vmem:[%s1879_s19 + $0x30] sm:$0xff] %v1315_v12   ;;  %943 = vadd.xlane.f32.xlu0 %v1962_v36  ;;  %v1482_v58 = vpop.eup %1481 }
 0x29d   : > { %v987_v57 = vmul.f32 %v1482_v58, %v1829_v55 }
 0x29f   : > { %v1484_v56 = vpop.eup %1483 }
 0x2a0   : > { %v988_v54 = vmul.f32 %v1484_v56, %v1883_v43  ;;  %v910_v33 = vpop.xlane.xlu1 %909  ;;  %v1486_v35 = vpop.eup %1485 }
 0x2a1   : > { %1487 = vrcp.f32 %v910_v33  ;;  %v992_v39 = vmul.f32 %v1486_v35, %v1866_v38 }
 0x2a2   : > { %v1310_v1 = vpack.c.bf16 %v988_v54, %v987_v57  ;;  %1489 = vrcp.f32 %v914_v61 }
 0x2a4   : > { %1366 = vst [vmem:[%s1879_s19 + $0x28] sm:$0xff] %v1310_v1  }
 0x2a7   : > { %v1488_v40 = vpop.eup %1487  ;;  %v918_v55 = vpop.xlane.xlu2 %917 }
 0x2a8   : > { %v991_v3 = vmul.f32 %v1488_v40, %v1890_v2  ;;  %v916_v5 = vpop.xlane.xlu1 %915  ;;  %v1490_v43 = vpop.eup %1489 }
 0x2a9   : > { %1491 = vrcp.f32 %v916_v5  ;;  %v993_v11 = vmul.f32 %v1490_v43, %v1881_v47 }
 0x2aa   : > { %v1320_v62 = vpack.c.bf16 %v992_v39, %v991_v3  ;;  %1493 = vrcp.f32 %v918_v55 }
 0x2ac   : > { %1368 = vst [vmem:[%s1879_s19 + $0x38] sm:$0xff] %v1320_v62  }
 0x2af   : > { %v1492_v8 = vpop.eup %1491  ;;  %v920_v18 = vpop.xlane.xlu0 %919 }
 0x2b0   : > { %v994_v14 = vmul.f32 %v1492_v8, %v1898_v50  ;;  %1495 = vrcp.f32 %v920_v18  ;;  %v1494_v38 = vpop.eup %1493 }
 0x2b1   : > { %v995_v19 = vmul.f32 %v1494_v38, %v1896_v9 }
 0x2b2   : > { %v1325_v15 = vpack.c.bf16 %v994_v14, %v993_v11 }
 0x2b4   : > { %1369 = vst [vmem:[%s1879_s19 + $0x40] sm:$0xff] %v1325_v15  }
 0x2b6   : > { %v1496_v2 = vpop.eup %1495 }
 0x2b7   : > { %v996_v6 = vmul.f32 %v1496_v2, %v1904_v10  ;;  %v922_v49 = vpop.xlane.xlu1 %921 }
 0x2b8   : > { %1497 = vrcp.f32 %v922_v49 }
 0x2b9   : > { %v1330_v42 = vpack.c.bf16 %v996_v6, %v995_v19 }
 0x2bb   : > { %1370 = vst [vmem:[%s1879_s19 + $0x48] sm:$0xff] %v1330_v42  }
 0x2be   : > { %v1498_v47 = vpop.eup %1497 }
 0x2bf   : > { %v924_v21 = vpop.xlane.xlu2 %923  ;;  %v997_v50 = vmul.f32 %v1498_v47, %v1910_v30 }
 0x2c0   : > { %1499 = vrcp.f32 %v924_v21 }
 0x2c6   : > { %v1500_v22 = vpop.eup %1499 }
 0x2c7   : > { %v998_v26 = vmul.f32 %v1500_v22, %v1915_v13  ;;  %v926_v48 = vpop.xlane.xlu0 %925 }
 0x2c8   : > { %1501 = vrcp.f32 %v926_v48 }
 0x2c9   : > { %v1335_v17 = vpack.c.bf16 %v998_v26, %v997_v50 }
 0x2cb   : > { %1371 = vst [vmem:[%s1879_s19 + $0x50] sm:$0xff] %v1335_v17  }
 0x2ce   : > { %v1502_v10 = vpop.eup %1501 }
 0x2cf   : > { %v928_v9 = vpop.xlane.xlu1 %927  ;;  %v999_v59 = vmul.f32 %v1502_v10, %v1921_v52 }
 0x2d0   : > { %1503 = vrcp.f32 %v928_v9 }
 0x2d6   : > { %v1504_v29 = vpop.eup %1503 }
 0x2d7   : > { %v1000_v16 = vmul.f32 %v1504_v29, %v1926_v27  ;;  %v930_v63 = vpop.xlane.xlu2 %929 }
 0x2d8   : > { %1505 = vrcp.f32 %v930_v63 }
 0x2d9   : > { %v1340_v34 = vpack.c.bf16 %v1000_v16, %v999_v59 }
 0x2db   : > { %1372 = vst [vmem:[%s1879_s19 + $0x58] sm:$0xff] %v1340_v34  }
 0x2de   : > { %v1506_v13 = vpop.eup %1505 }
 0x2df   : > { %v932_v30 = vpop.xlane.xlu0 %931  ;;  %v1001_v41 = vmul.f32 %v1506_v13, %v1932_v4 }
 0x2e0   : > { %1507 = vrcp.f32 %v932_v30 }
 0x2e6   : > { %v1508_v28 = vpop.eup %1507 }
 0x2e7   : > { %v1002_v45 = vmul.f32 %v1508_v28, %v1937_v0  ;;  %v934_v25 = vpop.xlane.xlu1 %933 }
 0x2e8   : > { %1509 = vrcp.f32 %v934_v25 }
 0x2e9   : > { %v1345_v44 = vpack.c.bf16 %v1002_v45, %v1001_v41 }
 0x2eb   : > { %1373 = vst [vmem:[%s1879_s19 + $0x60] sm:$0xff] %v1345_v44  }
 0x2ee   : > { %v1510_v27 = vpop.eup %1509 }
 0x2ef   : > { %v936_v52 = vpop.xlane.xlu2 %935  ;;  %v1003_v23 = vmul.f32 %v1510_v27, %v1941_v53 }
 0x2f0   : > { %1511 = vrcp.f32 %v936_v52 }
 0x2f6   : > { %v1512_v31 = vpop.eup %1511 }
 0x2f7   : > { %v1004_v7 = vmul.f32 %v1512_v31, %v1945_v37  ;;  %v938_v51 = vpop.xlane.xlu0 %937 }
 0x2f8   : > { %1513 = vrcp.f32 %v938_v51 }
 0x2f9   : > { %v1350_v46 = vpack.c.bf16 %v1004_v7, %v1003_v23 }
 0x2fb   : > { %1374 = vst [vmem:[%s1879_s19 + $0x68] sm:$0xff] %v1350_v46  }
 0x2fe   : > { %v1514_v0 = vpop.eup %1513 }
 0x2ff   : > { %v940_v4 = vpop.xlane.xlu1 %939  ;;  %v1005_v32 = vmul.f32 %v1514_v0, %v1949_v60 }
 0x300   : > { %1515 = vrcp.f32 %v940_v4 }
 0x306   : > { %v1516_v12 = vpop.eup %1515 }
 0x307   : > { %v1006_v58 = vmul.f32 %v1516_v12, %v1953_v24  ;;  %v942_v57 = vpop.xlane.xlu2 %941 }
 0x308   : > { %1517 = vrcp.f32 %v942_v57 }
 0x309   : > { %v1355_v56 = vpack.c.bf16 %v1006_v58, %v1005_v32 }
 0x30b   : > { %1375 = vst [vmem:[%s1879_s19 + $0x70] sm:$0xff] %v1355_v56  }
 0x30e   : > { %v1518_v37 = vpop.eup %1517 }
 0x30f   : > { %v944_v53 = vpop.xlane.xlu0 %943  ;;  %v1007_v33 = vmul.f32 %v1518_v37, %v1957_v20 }
 0x310   : > { %1519 = vrcp.f32 %v944_v53 }
 0x316   : > { %v1520_v54 = vpop.eup %1519 }
 0x317   : > { %v1008_v1 = vmul.f32 %v1520_v54, %v1962_v36 }
 0x319   : > { %v1360_v61 = vpack.c.bf16 %v1008_v1, %v1007_v33 }
 0x31b   : > { %1376 = vst [vmem:[%s1879_s19 + $0x78] sm:$0xff] %v1360_v61  }
 0x31c PF: > { %s15_s18 = sadd.s32 1, %s1527_s18  }
 0x31d   : > { %p12_p4 = scmp.ge.s32.totalorder %s15_s18, 4  }
 0x31f   :  { %14 = sbr.rel (!%p12_p4) target bundleno = 1 (0x1), region = 70 }

</bundles_post_ra>
